<compile_context>
chip_gen: v6e
topology: v6e:2x2x1
jax: 0.10.0
libtpu: 0.0.40
codegen_flags: <defaults>
</compile_context>

<pallas_src>
import functools

import numpy as np

import jax
import jax.numpy as jnp
from jax.experimental import pallas as pl
from jax.experimental.pallas import tpu as pltpu

SMOOTH_L1_BETA = 1.0  # CFG.smooth_l1_beta — deterministic, defined in-script

_STATIC_CHUNK_MAX = 64  # max features statically unrolled per grid step


def _round_up(x, m):
    return (x + m - 1) // m * m


def _cdiv(a, b):
    return (a + b - 1) // b


def _device_kind():
    try:
        return jax.devices()[0].device_kind.lower()
    except Exception:
        return ""


def _default_compute_dtype():
    kind = _device_kind()
    # v6e / v7x have native bf16 VALU (~2x elementwise throughput); v5e does not,
    # where bf16 would only add convert traffic.
    if any(tag in kind for tag in ("v6", "v7", "7x")):
        return jnp.bfloat16
    return jnp.float32


def _vmem_cap_bytes():
    kind = _device_kind()
    if any(tag in kind for tag in ("v7", "7x")):
        return 48 * 1024 * 1024    # 64 MiB VMEM per TensorCore on v7x
    return 100 * 1024 * 1024       # 128 MiB on v5e / v6e


def _label_diff_kernel(x_ref, yt_ref, o_ref, acc_ref=None, *, d_count, nd, beta,
                       inv_scale, compute_dtype):
    # x_ref  : (TI, DK)  rows i, feature chunk on lanes
    # yt_ref : (DK, TJ)  trans^T chunk: features on sublanes, rows j on lanes
    # o_ref  : (TI, TJ)  lane-dense output tile
    # acc_ref: (TI, TJ)  f32 scratch accumulator (present only when nd > 1)
    x = x_ref[...].astype(compute_dtype)     # (TI, DK)
    yt = yt_ref[...].astype(compute_dtype)   # (DK, TJ)

    beta_c = jnp.asarray(beta, compute_dtype)
    half_c = jnp.asarray(0.5, compute_dtype)

    def term(d):
        # Branch-free smooth-L1:
        #   m = min(|diff|, beta);   beta * smooth_l1(diff) = m * (|diff| - 0.5*m)
        # The uniform 1/beta (and 1/D mean) is folded into inv_scale at the end.
        xd = x[:, d:d + 1]           # (TI, 1)  -> broadcast along lanes
        yd = yt[d:d + 1, :]          # (1, TJ)  -> broadcast along sublanes
        adiff = jnp.abs(xd - yd)     # (TI, TJ)
        m = jnp.minimum(adiff, beta_c)
        return m * (adiff - half_c * m)

    # Tree accumulation: sum `group` consecutive feature terms in compute_dtype,
    # then one f32 convert+add, so a bf16 compute path is not capped by per-feature
    # f32-width adds. f32 compute accumulates term-by-term (group=1).
    group = 1 if compute_dtype == jnp.float32 else 4
    chunk_acc = None                 # first term peeled: no zero-fill + add
    d = 0
    while d < d_count:               # trace-time loop; d_count <= _STATIC_CHUNK_MAX
        part = term(d)
        for dd in range(d + 1, min(d + group, d_count)):
            part = part + term(dd)
        part32 = part.astype(jnp.float32)
        chunk_acc = part32 if chunk_acc is None else chunk_acc + part32
        d += group

    if nd == 1:
        o_ref[...] = (chunk_acc * inv_scale).astype(o_ref.dtype)
    else:
        k = pl.program_id(2)

        @pl.when(k == 0)
        def _():
            acc_ref[...] = chunk_acc

        @pl.when(k > 0)
        def _():
            acc_ref[...] = acc_ref[...] + chunk_acc

        @pl.when(k == nd - 1)
        def _():
            o_ref[...] = (acc_ref[...] * inv_scale).astype(o_ref.dtype)


def label_difference_trans(trans, *, beta=SMOOTH_L1_BETA, tile_i=512, tile_j=2048,
                           compute_dtype="auto", out_dtype=jnp.float32):
    """Pairwise smooth-L1 label difference matrix, mean over the feature dim.

    compute_dtype="auto" picks bf16 on v6e/v7x (VALU-bound kernel -> ~2x) and f32
    elsewhere. bf16 rounds the labels before differencing (~1e-3 relative on the
    result); pass compute_dtype=jnp.float32 when exact numerics matter.
    Accumulation is always float32. out_dtype=jnp.bfloat16 halves output
    writeback bytes when downstream tolerates it.
    """
    if trans.ndim == 1:
        trans = trans[:, None]
    N, D = trans.shape
    assert N >= 1 and D >= 1
    assert float(beta) > 0.0, "smooth-L1 beta must be > 0 (pure-L1 not supported)"

    if compute_dtype == "auto" or compute_dtype is None:
        compute_dtype = _default_compute_dtype()

    # Feature chunking: one static chunk for realistic D; a reduction grid axis
    # (accumulator pattern) for large D so code size / vreg pressure stay bounded.
    if D <= _STATIC_CHUNK_MAX:
        nd = 1
        dk = _round_up(D, 8)
        d_count = D                      # loop only over real features
    else:
        nd = _cdiv(D, _STATIC_CHUNK_MAX)
        dk = _round_up(_cdiv(D, nd), 8)
        d_count = dk                     # padded features are zeros -> term == 0
    d_pad = nd * dk

    # Tile sizes: TI multiple of 8 (sublanes), TJ multiple of 128 (lanes, unmasked
    # full-lane stores); large defaults to amortize per-step overhead, clamped to
    # the problem size and shrunk to fit the per-chip VMEM cap.
    vmem_cap = _vmem_cap_bytes()
    ti = _round_up(min(tile_i, _round_up(N, 8)), 8)
    tj = _round_up(min(tile_j, _round_up(N, 128)), 128)

    def vmem_usage(ti_, tj_):
        # double-buffered x chunk + trans^T chunk + out tile (+ f32 acc scratch)
        buffers = 2 * (ti_ * dk + dk * tj_ + ti_ * tj_)
        if nd > 1:
            buffers += ti_ * tj_
        return 4 * buffers

    headroom = 8 * 1024 * 1024
    while vmem_usage(ti, tj) + headroom > vmem_cap and tj > 128:
        tj = _round_up(tj // 2, 128)
    while vmem_usage(ti, tj) + headroom > vmem_cap and ti > 8:
        ti = _round_up(ti // 2, 8)

    n_pad_i = _round_up(N, ti)
    n_pad_j = _round_up(N, tj)
    vmem_limit = int(min(vmem_usage(ti, tj) + headroom, vmem_cap))

    x = trans.astype(jnp.float32)
    x = jnp.pad(x, ((0, 0), (0, d_pad - D)))              # pad feature dim (zeros)
    x_rows = jnp.pad(x, ((0, n_pad_i - N), (0, 0)))       # (Npi, Dp)  rows i
    x_cols_t = jnp.pad(x, ((0, n_pad_j - N), (0, 0))).T   # (Dp, Npj)  rows j, transposed

    kernel = functools.partial(
        _label_diff_kernel,
        d_count=d_count,
        nd=nd,
        beta=float(beta),
        inv_scale=1.0 / (float(D) * float(beta)),          # mean over D and 1/beta folded
        compute_dtype=compute_dtype,
    )

    scratch = (pltpu.VMEM((ti, tj), jnp.float32),) if nd > 1 else ()

    cost = pl.CostEstimate(
        flops=6 * n_pad_i * n_pad_j * D,
        transcendentals=0,
        bytes_accessed=(n_pad_i * n_pad_j * np.dtype(out_dtype).itemsize
                        + 4 * (n_pad_i + n_pad_j) * d_pad),
    )

    out_padded = pl.pallas_call(
        kernel,
        out_shape=jax.ShapeDtypeStruct((n_pad_i, n_pad_j), out_dtype),
        grid_spec=pltpu.PrefetchScalarGridSpec(
            num_scalar_prefetch=0,
            grid=(n_pad_i // ti, n_pad_j // tj, nd),       # i outer, j, feature-chunk inner
            in_specs=[
                # row block: independent of j -> stays VMEM-resident across inner loops
                pl.BlockSpec((ti, dk), lambda i, j, k: (i, k)),
                # trans^T block: j on the lane axis, streamed per step
                pl.BlockSpec((dk, tj), lambda i, j, k: (k, j)),
            ],
            out_specs=pl.BlockSpec((ti, tj), lambda i, j, k: (i, j)),
            scratch_shapes=scratch,
        ),
        compiler_params=pltpu.CompilerParams(
            dimension_semantics=("parallel", "parallel", "arbitrary"),
            vmem_limit_bytes=vmem_limit,
        ),
        cost_estimate=cost,
    )(x_rows, x_cols_t)

    return out_padded[:N, :N]


def _reference(trans, beta=SMOOTH_L1_BETA):
    if trans.ndim == 1:
        trans = trans[:, None]
    diff = trans[:, None, :] - trans[None, :, :]
    adiff = jnp.abs(diff)
    losses = jnp.where(adiff < beta, 0.5 * diff * diff / beta, adiff - 0.5 * beta)
    return losses.mean(-1)


if __name__ == "__main__":
    key = jax.random.PRNGKey(0)
    k1, k2, k3 = jax.random.split(key, 3)

    # realistic 3-D translation labels, unaligned batch -> padding path (exact f32)
    t1 = jax.random.normal(k1, (13, 3), dtype=jnp.float32)
    o1 = jax.block_until_ready(label_difference_trans(t1, compute_dtype=jnp.float32))
    r1 = _reference(t1)
    assert o1.shape == (13, 13)
    assert jnp.allclose(o1, r1, atol=1e-5, rtol=1e-5), "mismatch vs reference (13,3)"

    # larger feature dim (exact f32)
    t2 = jax.random.normal(k2, (16, 32), dtype=jnp.float32) * 2.0
    o2 = jax.block_until_ready(label_difference_trans(t2, compute_dtype=jnp.float32))
    r2 = _reference(t2)
    assert o2.shape == (16, 16)
    assert jnp.allclose(o2, r2, atol=1e-5, rtol=1e-5), "mismatch vs reference (16,32)"

    # feature dim > static chunk -> multi-chunk reduction grid axis (exact f32)
    t3 = jax.random.normal(k3, (10, 70), dtype=jnp.float32)
    o3 = jax.block_until_ready(label_difference_trans(t3, compute_dtype=jnp.float32))
    r3 = _reference(t3)
    assert o3.shape == (10, 10)
    assert jnp.allclose(o3, r3, atol=1e-5, rtol=1e-5), "mismatch vs reference (10,70)"

    # default "auto" compute dtype (bf16 on v6e/v7x) -> looser tolerance
    o4 = jax.block_until_ready(label_difference_trans(t2))
    assert o4.shape == (16, 16)
    assert jnp.allclose(o4, r2, atol=5e-2, rtol=5e-2), "mismatch vs reference (auto dtype)"

    print("KERNEL_OK")
</pallas_src>

<mosaic_0001>
module attributes {stable_mosaic.version = 11 : i64} {
  func.func @_label_diff_kernel(%arg0: i32, %arg1: i32, %arg2: i32, %arg3: memref<16x8xf32, #tpu.memory_space<vmem>>, %arg4: memref<8x128xf32, #tpu.memory_space<vmem>>, %arg5: memref<16x128xf32, #tpu.memory_space<vmem>>) attributes {dimension_semantics = [#tpu.dimension_semantics<parallel>, #tpu.dimension_semantics<parallel>, #tpu.dimension_semantics<arbitrary>], iteration_bounds = array<i64: 1, 1, 1>, scalar_prefetch = 0 : i64, scratch_operands = 0 : i64, tpu.core_type = #tpu.core_type<tc>, window_params = [{transform_indices = @transform_0, window_bounds = array<i64: 16, 8>}, {transform_indices = @transform_1, window_bounds = array<i64: 8, 128>}, {transform_indices = @transform_2, window_bounds = array<i64: 16, 128>}]} {
    %c0 = arith.constant 0 : index
    %c0_0 = arith.constant 0 : index
    %0 = vector.load %arg3[%c0, %c0_0] : memref<16x8xf32, #tpu.memory_space<vmem>>, vector<16x8xf32>
    %c0_1 = arith.constant 0 : index
    %c0_2 = arith.constant 0 : index
    %1 = vector.load %arg4[%c0_1, %c0_2] : memref<8x128xf32, #tpu.memory_space<vmem>>, vector<8x128xf32>
    %2 = vector.extract_strided_slice %0 {offsets = [0, 0], sizes = [16, 1], strides = [1, 1]} : vector<16x8xf32> to vector<16x1xf32>
    %3 = vector.extract_strided_slice %1 {offsets = [0, 0], sizes = [1, 128], strides = [1, 1]} : vector<8x128xf32> to vector<1x128xf32>
    %4 = vector.broadcast %2 : vector<16x1xf32> to vector<16x128xf32>
    %5 = vector.broadcast %3 : vector<1x128xf32> to vector<16x128xf32>
    %6 = arith.subf %4, %5 : vector<16x128xf32>
    %7 = math.absf %6 : vector<16x128xf32>
    %cst = arith.constant 1.000000e+00 : f32
    %8 = vector.broadcast %cst : f32 to vector<16x128xf32>
    %9 = arith.minimumf %7, %8 : vector<16x128xf32>
    %cst_3 = arith.constant 5.000000e-01 : f32
    %10 = vector.broadcast %cst_3 : f32 to vector<16x128xf32>
    %11 = arith.mulf %10, %9 : vector<16x128xf32>
    %12 = arith.subf %7, %11 : vector<16x128xf32>
    %13 = arith.mulf %9, %12 : vector<16x128xf32>
    %14 = vector.extract_strided_slice %0 {offsets = [0, 1], sizes = [16, 1], strides = [1, 1]} : vector<16x8xf32> to vector<16x1xf32>
    %15 = vector.extract_strided_slice %1 {offsets = [1, 0], sizes = [1, 128], strides = [1, 1]} : vector<8x128xf32> to vector<1x128xf32>
    %16 = vector.broadcast %14 : vector<16x1xf32> to vector<16x128xf32>
    %17 = vector.broadcast %15 : vector<1x128xf32> to vector<16x128xf32>
    %18 = arith.subf %16, %17 : vector<16x128xf32>
    %19 = math.absf %18 : vector<16x128xf32>
    %cst_4 = arith.constant 1.000000e+00 : f32
    %20 = vector.broadcast %cst_4 : f32 to vector<16x128xf32>
    %21 = arith.minimumf %19, %20 : vector<16x128xf32>
    %cst_5 = arith.constant 5.000000e-01 : f32
    %22 = vector.broadcast %cst_5 : f32 to vector<16x128xf32>
    %23 = arith.mulf %22, %21 : vector<16x128xf32>
    %24 = arith.subf %19, %23 : vector<16x128xf32>
    %25 = arith.mulf %21, %24 : vector<16x128xf32>
    %26 = arith.addf %13, %25 : vector<16x128xf32>
    %27 = vector.extract_strided_slice %0 {offsets = [0, 2], sizes = [16, 1], strides = [1, 1]} : vector<16x8xf32> to vector<16x1xf32>
    %28 = vector.extract_strided_slice %1 {offsets = [2, 0], sizes = [1, 128], strides = [1, 1]} : vector<8x128xf32> to vector<1x128xf32>
    %29 = vector.broadcast %27 : vector<16x1xf32> to vector<16x128xf32>
    %30 = vector.broadcast %28 : vector<1x128xf32> to vector<16x128xf32>
    %31 = arith.subf %29, %30 : vector<16x128xf32>
    %32 = math.absf %31 : vector<16x128xf32>
    %cst_6 = arith.constant 1.000000e+00 : f32
    %33 = vector.broadcast %cst_6 : f32 to vector<16x128xf32>
    %34 = arith.minimumf %32, %33 : vector<16x128xf32>
    %cst_7 = arith.constant 5.000000e-01 : f32
    %35 = vector.broadcast %cst_7 : f32 to vector<16x128xf32>
    %36 = arith.mulf %35, %34 : vector<16x128xf32>
    %37 = arith.subf %32, %36 : vector<16x128xf32>
    %38 = arith.mulf %34, %37 : vector<16x128xf32>
    %39 = arith.addf %26, %38 : vector<16x128xf32>
    %cst_8 = arith.constant 0.333333343 : f32
    %40 = vector.broadcast %cst_8 : f32 to vector<16x128xf32>
    %41 = arith.mulf %39, %40 : vector<16x128xf32>
    %c0_9 = arith.constant 0 : index
    %c0_10 = arith.constant 0 : index
    %42 = vector.load %arg5[%c0_9, %c0_10] : memref<16x128xf32, #tpu.memory_space<vmem>>, vector<16x128xf32>
    tpu.vector_store %arg5[%c0_9, %c0_10], %41 {strides = array<i32>} : memref<16x128xf32, #tpu.memory_space<vmem>>, vector<16x128xf32>,
    return
  }
  func.func @transform_0(%arg0: i32, %arg1: i32, %arg2: i32) -> (i32, i32) {
    %c0_i32 = arith.constant 0 : i32
    return %arg0, %arg2 : i32, i32
  }
  func.func @transform_1(%arg0: i32, %arg1: i32, %arg2: i32) -> (i32, i32) {
    %c0_i32 = arith.constant 0 : i32
    return %arg2, %arg1 : i32, i32
  }
  func.func @transform_2(%arg0: i32, %arg1: i32, %arg2: i32) -> (i32, i32) {
    %c0_i32 = arith.constant 0 : i32
    return %arg0, %arg1 : i32, i32
  }
}

</mosaic_0001>

<bundles_post_ra>
// kernel: tpu_custom_call.1
= control target key start
LH: loop header
LB: loop body
LE: loop exit
PB: predicated region body
PF: predicated region fallthrough
CT: control target
= control target key end

     0   :  { %v145_v1 = vmov 1   ;;  %v146_v2 = vmov 0   ;;  %s178_s0 = inlined_call_operand.vmem [shape: f32[16,8], index: 0, kind: input, shape index: {}]   ;;  %s179_s1 = inlined_call_operand.vmem [shape: f32[8,128], index: 1, kind: input, shape index: {}]   ;;  %s180_s2 = inlined_call_operand.hbm [shape: f32[16,128], index: 2, kind: output, shape index: {}]  }
   0x1   :  { %v12_v0 = vld [vmem:[%s178_s0] sm:$0xff]  ;;  %120 = vset.pattern.permute.xlu1 %v145_v1  ;;  %119 = vset.pattern.permute.xlu0 %v146_v2 }
   0x2   :  { %7 = vsyncpa [#allocation3], 0  ;;  %42 = vperm.xlu1 %120, %v12_v0   ;;  %17 = vperm.xlu0 %119, %v12_v0   ;;  %v13_v3 = vld [vmem:[%s178_s0 + $0x8] sm:$0xff]  ;;  %v147_v4 = vmov 2   ;;  %v25_v5 = vlaneseq  ;;  %v14_v9 = vld [vmem:[%s179_s1] sm:$0xff]  ;;  %s148_s0 = smov [#allocation2]  }
   0x3   :  { %s102_s1 = sshll.u32 %s148_s0, 4  ;;  %s103_s1 = int_to_ptr.vmem [resolvable:$true] %s102_s1 }
   0x4   :  { %v26_v6 = vshrl.u32 %v25_v5, 7  ;;  %s123_s15 = scalar_lea.vmem %s103_s1, 256  ;;  %p128_p1 = scmp.lt.s32.totalorder %s103_s1, %s103_s1 }
   0x5   :  { %p124_p0 = scmp.ne.s32.totalorder %s103_s1, %s123_s15  ;;  %p129_p2 = scmp.lt.s32.totalorder %s123_s15, %s123_s15 }
   0x6   :  { %46 = vperm.xlu1 %120, %v13_v3   ;;  %22 = vperm.xlu0 %119, %v13_v3   ;;  %v51_v7 = vsub.s32 1, %v26_v6  ;;  %v27_v8 = vsub.s32 0, %v26_v6  ;;  %v77_v16 = vsub.s32 2, %v26_v6 }
   0x7   :  { %p130_p3 = por %p129_p2, %p128_p1 }
   0x8   :  { %v52_v10 = vrot.slane %v14_v9, %v51_v7  ;;  %v28_v11 = vrot.slane %v14_v9, %v27_v8  ;;  %v78_v25 = vrot.slane %v14_v9, %v77_v16 }
   0x9   :  { %p131_p4 = pnand %p130_p3, %p124_p0 }
   0xa   :  { %122 = vset.pattern.permute.xlu1 %v147_v4  ;;  %121 = vset.pattern.permute.xlu0 %v147_v4 }
   0xb   :  { %72 = vperm.xlu1 %122, %v13_v3   ;;  %68 = vperm.xlu0 %121, %v12_v0  }
  0x7d   :  { %v43_v12 = vpop.permute.xlu1 %42  ;;  %v18_v13 = vpop.permute.xlu0 %17 }
  0x7e   :  { %v53_v14 = vsub.f32 %v43_v12, %v52_v10  ;;  %v29_v15 = vsub.f32 %v18_v13, %v28_v11 }
  0x80   :  { %v55_v17 = vand.u32 2147483647, %v53_v14  ;;  %v31_v18 = vand.u32 2147483647, %v29_v15 }
  0x81   :  { %v47_v19 = vpop.permute.xlu1 %46  ;;  %v23_v20 = vpop.permute.xlu0 %22 }
  0x82   :  { %v57_v21 = vmin.f32 %v55_v17, 1.0  ;;  %v33_v22 = vmin.f32 %v31_v18, 1.0  ;;  %v54_v23 = vsub.f32 %v47_v19, %v52_v10  ;;  %v30_v24 = vsub.f32 %v23_v20, %v28_v11 }
  0x84   :  { %v59_v26 = vmul.f32 0.5, %v57_v21  ;;  %v35_v27 = vmul.f32 0.5, %v33_v22  ;;  %v56_v28 = vand.u32 2147483647, %v54_v23  ;;  %v32_v29 = vand.u32 2147483647, %v30_v24 }
  0x86   :  { %v58_v30 = vmin.f32 %v56_v28, 1.0  ;;  %v34_v31 = vmin.f32 %v32_v29, 1.0  ;;  %v73_v32 = vpop.permute.xlu1 %72  ;;  %v69_v33 = vpop.permute.xlu0 %68  ;;  %v61_v36 = vsub.f32 %v55_v17, %v59_v26  ;;  %v37_v37 = vsub.f32 %v31_v18, %v35_v27 }
  0x87   :  { %v80_v34 = vsub.f32 %v73_v32, %v78_v25  ;;  %v79_v35 = vsub.f32 %v69_v33, %v78_v25 }
  0x88   :  { %v60_v38 = vmul.f32 0.5, %v58_v30  ;;  %v36_v39 = vmul.f32 0.5, %v34_v31  ;;  %v63_v46 = vmul.f32 %v61_v36, %v57_v21  ;;  %v39_v47 = vmul.f32 %v37_v37, %v33_v22 }
  0x89   :  { %v82_v40 = vand.u32 2147483647, %v80_v34  ;;  %v81_v41 = vand.u32 2147483647, %v79_v35 }
  0x8a   :  { %v62_v42 = vsub.f32 %v56_v28, %v60_v38  ;;  %v38_v43 = vsub.f32 %v32_v29, %v36_v39  ;;  %v65_v54 = vadd.f32 %v63_v46, %v39_v47 }
  0x8b   :  { %v84_v44 = vmin.f32 %v82_v40, 1.0  ;;  %v83_v45 = vmin.f32 %v81_v41, 1.0 }
  0x8c   :  { %v64_v48 = vmul.f32 %v62_v42, %v58_v30  ;;  %v40_v49 = vmul.f32 %v38_v43, %v34_v31 }
  0x8d   :  { %v86_v50 = vmul.f32 0.5, %v84_v44  ;;  %v85_v51 = vmul.f32 0.5, %v83_v45 }
  0x8e   :  { %v66_v55 = vadd.f32 %v64_v48, %v40_v49 }
  0x8f   :  { %v88_v52 = vsub.f32 %v82_v40, %v86_v50  ;;  %v87_v53 = vsub.f32 %v81_v41, %v85_v51 }
  0x91   :  { %v90_v56 = vmul.f32 %v88_v52, %v84_v44  ;;  %v89_v57 = vmul.f32 %v87_v53, %v83_v45 }
  0x93   :  { %v92_v58 = vadd.f32 %v90_v56, %v66_v55  ;;  %v91_v59 = vadd.f32 %v89_v57, %v65_v54 }
  0x95   :  { %v94_v60 = vmul.f32 0.33333334, %v92_v58  ;;  %v93_v61 = vmul.f32 0.33333334, %v91_v59 }
  0x97   :  { %96 = vst [vmem:[#allocation2 + $0x8] sm:$0xff] %v94_v60  ;;  %95 = vst [vmem:[#allocation2] sm:$0xff] %v93_v61 }
  0x98   :  { %134 = shalt.err (!%p131_p4)
}
  0x99   :  { %s149_s16 = smov 128   ;;  %s150_s17 = smov 8  }
  0x9a   :  { %108 = dma.vmem_to_hbm [thread:$0]  %s103_s1, 256, %s180_s2, [#allocation3], %s149_s16, %s149_s16, %s150_s17  }
  0x9b   :  { %143 = dma.done.wait [#allocation3], 256  }
  0x9c   :  { %144 = vsyncadd [#allocation3], 4294967040 }
  0x9d   :  { %112 = vsyncpa [#allocation3], 1 }

</bundles_post_ra>
